<compile_context>
chip_gen: v5e
topology: v5e:2x2
jax: 0.10.0
libtpu: 0.0.40
codegen_flags: <defaults>
</compile_context>

<pallas_src>
import math
import jax
import jax.numpy as jnp
from jax.experimental import pallas as pl
from jax.experimental.pallas import tpu as pltpu

LN_EPS = 1e-5
COMPUTE_DTYPE = jnp.bfloat16     # MXU operand dtype
ACT_DTYPE = jnp.bfloat16         # inter-kernel activations / KV caches
FAST_DTYPE = jnp.bfloat16        # exp / tanh dtype; use jnp.float32 on v5e
VMEM_LIMIT_BYTES = 64 * 1024 * 1024


def _gelu_tanh(x):
    # TODO(synk): HF "gelu" is exact erf-GELU; tanh approximation used here.
    c = math.sqrt(2.0 / math.pi)
    return 0.5 * x * (1.0 + jnp.tanh(c * (x + 0.044715 * x * x * x)))


def _layernorm(y, gamma, beta):
    """Two-pass LayerNorm over the last axis (f32 in / f32 out)."""
    mean = jnp.mean(y, axis=-1, keepdims=True)
    yc = y - mean
    var = jnp.mean(yc * yc, axis=-1, keepdims=True)
    return yc * jax.lax.rsqrt(var + LN_EPS) * gamma + beta


def _single_head_attention(q, k, v, mask, compute_dtype, fast_dtype):
    """One attention head. q:(T,Dh) f32 (pre-scaled), k/v:(S,Dh) f32, mask:(T,S) f32."""
    s = jax.lax.dot_general(q.astype(compute_dtype), k.astype(compute_dtype),
                            (((1,), (1,)), ((), ())),
                            preferred_element_type=jnp.float32) + mask
    m = jnp.max(s, axis=-1, keepdims=True)
    p = jnp.exp((s - m).astype(fast_dtype))                     # EUP in fast dtype
    l = jnp.sum(p.astype(jnp.float32), axis=-1, keepdims=True)  # f32 row sums
    ctx = jnp.dot(p.astype(compute_dtype), v.astype(compute_dtype),
                  preferred_element_type=jnp.float32)
    return ctx * pl.reciprocal(l, approx=True)                  # (T, Dh) f32


def _prep_mask(mask, T, S):
    """Accept (T,S), (B,T,S) or HF-style (B,1,T,S); return (1|B, T, S) f32."""
    m = jnp.asarray(mask, jnp.float32)
    if m.ndim == 4:
        m = m[:, 0]
    if m.ndim == 2:
        m = m.reshape(1, T, S)
    return m


def _mask_spec(m, T, S):
    if m.shape[0] == 1:   # shared mask: never re-replicated per batch
        return pl.BlockSpec((1, T, S), lambda b, h: (0, 0, 0))
    return pl.BlockSpec((1, T, S), lambda b, h: (b, 0, 0))


# ---------------------------------------------------------------------------
# Kernel 1: fused self_attn + tg_self_attn (tied q/k/v weights) + residual + LN
# grid = (B, H); heads accumulate the output projection into a f32 scratch.
# ---------------------------------------------------------------------------
def _make_fused_self_attn_ln_kernel(head_dim, compute_dtype, fast_dtype):
    Dh = head_dim

    def kernel(x_ref, m0_ref, m1_ref, wqkv_ref, b1_ref, b2_ref,
               wo1_ref, wo2_ref, bo_ref, g_ref, beta_ref,
               out_ref, k1_ref, v1_ref, k2_ref, v2_ref, acc_ref):
        h = pl.program_id(1)

        @pl.when(h == 0)
        def _():
            acc_ref[...] = jnp.zeros_like(acc_ref)

        xc = x_ref[0].astype(compute_dtype)                     # (T, D)
        m0 = m0_ref[0].astype(jnp.float32)                      # (T, T)
        m1 = m1_ref[0].astype(jnp.float32)

        # Shared per-head QKV projection (weights tied; only biases differ).
        base = jnp.dot(xc, wqkv_ref[0], preferred_element_type=jnp.float32)  # (T, 3Dh)
        b1 = b1_ref[0].astype(jnp.float32)                      # (1, 3Dh)
        b2 = b2_ref[0].astype(jnp.float32)

        # q scaling is pre-folded into the q weight columns and q biases.
        q1 = base[:, :Dh] + b1[:, :Dh]
        k1 = base[:, Dh:2 * Dh] + b1[:, Dh:2 * Dh]
        v1 = base[:, 2 * Dh:] + b1[:, 2 * Dh:]
        q2 = base[:, :Dh] + b2[:, :Dh]
        k2 = base[:, Dh:2 * Dh] + b2[:, Dh:2 * Dh]
        v2 = base[:, 2 * Dh:] + b2[:, 2 * Dh:]

        # Head-major KV caches, written directly (no post-kernel transpose).
        k1_ref[0, 0] = k1.astype(k1_ref.dtype)
        v1_ref[0, 0] = v1.astype(v1_ref.dtype)
        k2_ref[0, 0] = k2.astype(k2_ref.dtype)
        v2_ref[0, 0] = v2.astype(v2_ref.dtype)

        ctx1 = _single_head_attention(q1, k1, v1, m0, compute_dtype, fast_dtype)
        ctx2 = _single_head_attention(q2, k2, v2, m1, compute_dtype, fast_dtype)

        acc_ref[...] += (
            jnp.dot(ctx1.astype(compute_dtype), wo1_ref[0],
                    preferred_element_type=jnp.float32)
            + jnp.dot(ctx2.astype(compute_dtype), wo2_ref[0],
                      preferred_element_type=jnp.float32))

        @pl.when(h == pl.num_programs(1) - 1)
        def _():
            y = x_ref[0].astype(jnp.float32) + acc_ref[...] + bo_ref[...]
            out_ref[0] = _layernorm(y, g_ref[...], beta_ref[...]).astype(out_ref.dtype)

    return kernel


def fused_self_attn_block(x, mask0, mask1, p_self, p_tg, p_ln, num_heads,
                          compute_dtype=COMPUTE_DTYPE, act_dtype=ACT_DTYPE,
                          fast_dtype=FAST_DTYPE):
    B, T, D = x.shape
    H = num_heads
    Dh = D // H
    scaling = Dh ** -0.5

    tied = all(p_self[n] is p_tg[n] for n in ("q_w", "k_w", "v_w"))
    if not tied:
        # TODO(synk): untied tg_self_attn q/k/v weights would need a second
        # per-head QKV matmul path; the reference config ties all three.
        raise NotImplementedError("fused_self_attn_block requires tied q/k/v weights")

    x = x.astype(act_dtype)
    mask0p = _prep_mask(mask0, T, T)
    mask1p = _prep_mask(mask1, T, T)

    # Per-head weight blocks: (H, D, 3*Dh) with q columns pre-scaled.
    def cols(w_t):
        return w_t.reshape(D, H, Dh)
    wq_t = p_self["q_w"].T * scaling
    wqkv_heads = jnp.transpose(
        jnp.stack([cols(wq_t), cols(p_self["k_w"].T), cols(p_self["v_w"].T)], axis=2),
        (1, 0, 2, 3)).reshape(H, D, 3 * Dh).astype(compute_dtype)

    def bias_heads(bq, bk, bv):
        return jnp.stack([bq.reshape(H, Dh), bk.reshape(H, Dh), bv.reshape(H, Dh)],
                         axis=1).reshape(H, 1, 3 * Dh).astype(jnp.float32)
    b1_heads = bias_heads(p_self["q_b"] * scaling, p_self["k_b"], p_self["v_b"])
    b2_heads = bias_heads(p_tg["q_b"] * scaling, p_tg["k_b"], p_tg["v_b"])

    wo1_heads = p_self["o_w"].T.reshape(H, Dh, D).astype(compute_dtype)
    wo2_heads = p_tg["o_w"].T.reshape(H, Dh, D).astype(compute_dtype)
    bo_sum = (p_self["o_b"] + p_tg["o_b"]).reshape(1, D).astype(jnp.float32)
    gamma = p_ln["gamma"].reshape(1, D).astype(jnp.float32)
    beta = p_ln["beta"].reshape(1, D).astype(jnp.float32)

    kernel = _make_fused_self_attn_ln_kernel(Dh, compute_dtype, fast_dtype)

    x_spec = pl.BlockSpec((1, T, D), lambda b, h: (b, 0, 0))
    cache_spec = pl.BlockSpec((1, 1, T, Dh), lambda b, h: (b, h, 0, 0))

    def head_spec(shape):
        return pl.BlockSpec((1,) + shape, lambda b, h: (h, 0, 0))

    def const_spec(shape):
        return pl.BlockSpec(shape, lambda b, h: (0, 0))

    out, k1, v1, k2, v2 = pl.pallas_call(
        kernel,
        grid=(B, H),
        in_specs=[
            x_spec, _mask_spec(mask0p, T, T), _mask_spec(mask1p, T, T),
            head_spec((D, 3 * Dh)),
            head_spec((1, 3 * Dh)),
            head_spec((1, 3 * Dh)),
            head_spec((Dh, D)),
            head_spec((Dh, D)),
            const_spec((1, D)), const_spec((1, D)), const_spec((1, D)),
        ],
        out_specs=[x_spec, cache_spec, cache_spec, cache_spec, cache_spec],
        out_shape=[jax.ShapeDtypeStruct((B, T, D), act_dtype)]
                  + [jax.ShapeDtypeStruct((B, H, T, Dh), act_dtype)] * 4,
        scratch_shapes=[pltpu.VMEM((T, D), jnp.float32)],
        compiler_params=pltpu.CompilerParams(
            dimension_semantics=("parallel", "arbitrary"),
            vmem_limit_bytes=VMEM_LIMIT_BYTES),
    )(x, mask0p, mask1p, wqkv_heads, b1_heads, b2_heads,
      wo1_heads, wo2_heads, bo_sum, gamma, beta)

    # TODO(synk): for very long T on v7x (64 MiB VMEM), add a query-time tile
    # axis with K/V held in a VMEM scratch; full-T blocks are fine here.
    return out, (k1, v1), (k2, v2)


# ---------------------------------------------------------------------------
# Kernel 2: cross attention + residual + LN, grid = (B, H)
# ---------------------------------------------------------------------------
def _make_cross_attn_ln_kernel(head_dim, compute_dtype, fast_dtype):
    Dh = head_dim

    def kernel(x_ref, enc_ref, m_ref, wq_ref, bq_ref, wkv_ref, bkv_ref,
               wo_ref, bo_ref, g_ref, beta_ref, out_ref, k_ref, v_ref, acc_ref):
        h = pl.program_id(1)

        @pl.when(h == 0)
        def _():
            acc_ref[...] = jnp.zeros_like(acc_ref)

        xc = x_ref[0].astype(compute_dtype)                     # (T, D)
        ec = enc_ref[0].astype(compute_dtype)                   # (S, D)
        mask = m_ref[0].astype(jnp.float32)                     # (T, S)

        q = jnp.dot(xc, wq_ref[0], preferred_element_type=jnp.float32) + bq_ref[0]
        kv = jnp.dot(ec, wkv_ref[0], preferred_element_type=jnp.float32) + bkv_ref[0]
        k = kv[:, :Dh]
        v = kv[:, Dh:]
        k_ref[0, 0] = k.astype(k_ref.dtype)                     # head-major cache
        v_ref[0, 0] = v.astype(v_ref.dtype)

        ctx = _single_head_attention(q, k, v, mask, compute_dtype, fast_dtype)
        acc_ref[...] += jnp.dot(ctx.astype(compute_dtype), wo_ref[0],
                                preferred_element_type=jnp.float32)

        @pl.when(h == pl.num_programs(1) - 1)
        def _():
            y = x_ref[0].astype(jnp.float32) + acc_ref[...] + bo_ref[...]
            out_ref[0] = _layernorm(y, g_ref[...], beta_ref[...]).astype(out_ref.dtype)

    return kernel


def cross_attn_block(x, enc, mask, p, p_ln, num_heads,
                     compute_dtype=COMPUTE_DTYPE, act_dtype=ACT_DTYPE,
                     fast_dtype=FAST_DTYPE):
    B, T, D = x.shape
    S = enc.shape[1]
    H = num_heads
    Dh = D // H
    scaling = Dh ** -0.5

    x = x.astype(act_dtype)
    enc = enc.astype(act_dtype)
    maskp = _prep_mask(mask, T, S)

    wq_heads = (p["q_w"].T * scaling).reshape(D, H, Dh).transpose(1, 0, 2) \
        .astype(compute_dtype)                                   # (H, D, Dh)
    bq_heads = (p["q_b"] * scaling).reshape(H, 1, Dh).astype(jnp.float32)
    wkv_heads = jnp.transpose(
        jnp.stack([p["k_w"].T.reshape(D, H, Dh), p["v_w"].T.reshape(D, H, Dh)], axis=2),
        (1, 0, 2, 3)).reshape(H, D, 2 * Dh).astype(compute_dtype)
    bkv_heads = jnp.stack([p["k_b"].reshape(H, Dh), p["v_b"].reshape(H, Dh)],
                          axis=1).reshape(H, 1, 2 * Dh).astype(jnp.float32)
    wo_heads = p["o_w"].T.reshape(H, Dh, D).astype(compute_dtype)
    bo = p["o_b"].reshape(1, D).astype(jnp.float32)
    gamma = p_ln["gamma"].reshape(1, D).astype(jnp.float32)
    beta = p_ln["beta"].reshape(1, D).astype(jnp.float32)

    kernel = _make_cross_attn_ln_kernel(Dh, compute_dtype, fast_dtype)

    x_spec = pl.BlockSpec((1, T, D), lambda b, h: (b, 0, 0))
    enc_spec = pl.BlockSpec((1, S, D), lambda b, h: (b, 0, 0))
    cache_spec = pl.BlockSpec((1, 1, S, Dh), lambda b, h: (b, h, 0, 0))

    def head_spec(shape):
        return pl.BlockSpec((1,) + shape, lambda b, h: (h, 0, 0))

    def const_spec(shape):
        return pl.BlockSpec(shape, lambda b, h: (0, 0))

    out, k_cache, v_cache = pl.pallas_call(
        kernel,
        grid=(B, H),
        in_specs=[
            x_spec, enc_spec, _mask_spec(maskp, T, S),
            head_spec((D, Dh)), head_spec((1, Dh)),
            head_spec((D, 2 * Dh)), head_spec((1, 2 * Dh)),
            head_spec((Dh, D)),
            const_spec((1, D)), const_spec((1, D)), const_spec((1, D)),
        ],
        out_specs=[x_spec, cache_spec, cache_spec],
        out_shape=[
            jax.ShapeDtypeStruct((B, T, D), act_dtype),
            jax.ShapeDtypeStruct((B, H, S, Dh), act_dtype),
            jax.ShapeDtypeStruct((B, H, S, Dh), act_dtype),
        ],
        scratch_shapes=[pltpu.VMEM((T, D), jnp.float32)],
        compiler_params=pltpu.CompilerParams(
            dimension_semantics=("parallel", "arbitrary"),
            vmem_limit_bytes=VMEM_LIMIT_BYTES),
    )(x, enc, maskp, wq_heads, bq_heads, wkv_heads, bkv_heads, wo_heads,
      bo, gamma, beta)

    return out, (k_cache, v_cache)


# ---------------------------------------------------------------------------
# Kernel 3: FFN (F-tiled) + residual + LN with f32 accumulator scratch
# ---------------------------------------------------------------------------
def _pick_f_tile(F, target=512):
    """Largest divisor of F that is <= target and 128-aligned (or F itself)."""
    t = min(target, F)
    while t > 0:
        if F % t == 0 and (t % 128 == 0 or t == F):
            return t
        t -= 1
    return F


def _make_ffn_ln_kernel(compute_dtype, fast_dtype):
    def kernel(x_ref, w1_ref, b1_ref, w2_ref, b2_ref, g_ref, beta_ref,
               out_ref, acc_ref):
        f = pl.program_id(1)

        @pl.when(f == 0)
        def _():
            acc_ref[...] = jnp.zeros_like(acc_ref)

        xc = x_ref[0].astype(compute_dtype)                     # (T, D)
        hpre = jnp.dot(xc, w1_ref[...],
                       preferred_element_type=jnp.float32) + b1_ref[...]
        hact = _gelu_tanh(hpre.astype(fast_dtype))              # tanh on EUP, fast dtype
        acc_ref[...] += jnp.dot(hact.astype(compute_dtype), w2_ref[...],
                                preferred_element_type=jnp.float32)

        @pl.when(f == pl.num_programs(1) - 1)
        def _():
            y = x_ref[0].astype(jnp.float32) + acc_ref[...] + b2_ref[...]
            out_ref[0] = _layernorm(y, g_ref[...], beta_ref[...]).astype(out_ref.dtype)

    return kernel


def ffn_layernorm(x, p_fc1, p_fc2, p_ln, compute_dtype=COMPUTE_DTYPE,
                  act_dtype=ACT_DTYPE, fast_dtype=FAST_DTYPE, f_tile=512):
    B, T, D = x.shape
    F = p_fc1["w"].shape[0]
    ft = _pick_f_tile(F, f_tile)
    nF = F // ft

    x = x.astype(act_dtype)
    w1 = p_fc1["w"].T.astype(compute_dtype)                     # (D, F)
    b1 = p_fc1["b"].reshape(1, F).astype(jnp.float32)
    w2 = p_fc2["w"].T.astype(compute_dtype)                     # (F, D)
    b2 = p_fc2["b"].reshape(1, D).astype(jnp.float32)
    gamma = p_ln["gamma"].reshape(1, D).astype(jnp.float32)
    beta = p_ln["beta"].reshape(1, D).astype(jnp.float32)

    kernel = _make_ffn_ln_kernel(compute_dtype, fast_dtype)

    return pl.pallas_call(
        kernel,
        grid=(B, nF),
        in_specs=[
            pl.BlockSpec((1, T, D), lambda b, f: (b, 0, 0)),
            pl.BlockSpec((D, ft), lambda b, f: (0, f)),
            pl.BlockSpec((1, ft), lambda b, f: (0, f)),
            pl.BlockSpec((ft, D), lambda b, f: (f, 0)),
            pl.BlockSpec((1, D), lambda b, f: (0, 0)),
            pl.BlockSpec((1, D), lambda b, f: (0, 0)),
            pl.BlockSpec((1, D), lambda b, f: (0, 0)),
        ],
        out_specs=pl.BlockSpec((1, T, D), lambda b, f: (b, 0, 0)),
        out_shape=jax.ShapeDtypeStruct((B, T, D), act_dtype),
        scratch_shapes=[pltpu.VMEM((T, D), jnp.float32)],
        compiler_params=pltpu.CompilerParams(
            dimension_semantics=("parallel", "arbitrary"),
            vmem_limit_bytes=VMEM_LIMIT_BYTES),
    )(x, w1, b1, w2, b2, gamma, beta)


# ---------------------------------------------------------------------------
# Full decoder layer (use_external_feature = False, eval mode, no kv cache in).
# ---------------------------------------------------------------------------
def bart_decoder_layer(hidden_states, attention_masks, encoder_hidden_states,
                       encoder_attention_mask, params, num_heads,
                       compute_dtype=COMPUTE_DTYPE, act_dtype=ACT_DTYPE,
                       fast_dtype=FAST_DTYPE):
    hidden_states = hidden_states.astype(act_dtype)
    encoder_hidden_states = encoder_hidden_states.astype(act_dtype)

    # self_attn + tg_self_attn + residual + self_attn_layer_norm (one kernel)
    hidden_states, present_kv1, present_kv2 = fused_self_attn_block(
        hidden_states, attention_masks[0], attention_masks[1],
        params["self_attn"], params["tg_self_attn"],
        params["self_attn_layer_norm"], num_heads,
        compute_dtype, act_dtype, fast_dtype)
    present_key_value = tuple(zip(present_kv1, present_kv2))

    # cross attention + residual + encoder_attn_layer_norm (one kernel)
    hidden_states, cross_present_kv = cross_attn_block(
        hidden_states, encoder_hidden_states, encoder_attention_mask,
        params["encoder_attn"], params["encoder_attn_layer_norm"],
        num_heads, compute_dtype, act_dtype, fast_dtype)
    present_key_value = present_key_value + cross_present_kv

    # feed-forward + residual + final_layer_norm (one kernel)
    hidden_states = ffn_layernorm(hidden_states, params["fc1"], params["fc2"],
                                  params["final_layer_norm"],
                                  compute_dtype, act_dtype, fast_dtype)
    return hidden_states, present_key_value


# ---------------------------------------------------------------------------
# Deterministic parameter init (shapes follow BartDecoderLayer.__init__).
# ---------------------------------------------------------------------------
def _init_attn(key, d):
    ks = jax.random.split(key, 8)
    return {
        "q_w": 0.02 * jax.random.normal(ks[0], (d, d), jnp.float32),
        "q_b": 0.02 * jax.random.normal(ks[1], (d,), jnp.float32),
        "k_w": 0.02 * jax.random.normal(ks[2], (d, d), jnp.float32),
        "k_b": 0.02 * jax.random.normal(ks[3], (d,), jnp.float32),
        "v_w": 0.02 * jax.random.normal(ks[4], (d, d), jnp.float32),
        "v_b": 0.02 * jax.random.normal(ks[5], (d,), jnp.float32),
        "o_w": 0.02 * jax.random.normal(ks[6], (d, d), jnp.float32),
        "o_b": 0.02 * jax.random.normal(ks[7], (d,), jnp.float32),
    }


def init_params(key, d_model, ffn_dim, tg_tie_q=True, tg_tie_k=True, tg_tie_v=True):
    keys = jax.random.split(key, 8)
    params = {
        "self_attn": _init_attn(keys[0], d_model),
        "tg_self_attn": _init_attn(keys[1], d_model),
        "encoder_attn": _init_attn(keys[2], d_model),
        "self_attn_layer_norm": {"gamma": jnp.ones((d_model,), jnp.float32),
                                 "beta": jnp.zeros((d_model,), jnp.float32)},
        "encoder_attn_layer_norm": {"gamma": jnp.ones((d_model,), jnp.float32),
                                    "beta": jnp.zeros((d_model,), jnp.float32)},
        "final_layer_norm": {"gamma": jnp.ones((d_model,), jnp.float32),
                             "beta": jnp.zeros((d_model,), jnp.float32)},
        "fc1": {"w": 0.02 * jax.random.normal(keys[3], (ffn_dim, d_model), jnp.float32),
                "b": 0.02 * jax.random.normal(keys[4], (ffn_dim,), jnp.float32)},
        "fc2": {"w": 0.02 * jax.random.normal(keys[5], (d_model, ffn_dim), jnp.float32),
                "b": 0.02 * jax.random.normal(keys[6], (d_model,), jnp.float32)},
    }
    # config.tg_args weight-tying (weights only, like the PyTorch module)
    if tg_tie_q:
        params["tg_self_attn"]["q_w"] = params["self_attn"]["q_w"]
    if tg_tie_k:
        params["tg_self_attn"]["k_w"] = params["self_attn"]["k_w"]
    if tg_tie_v:
        params["tg_self_attn"]["v_w"] = params["self_attn"]["v_w"]
    return params


if __name__ == "__main__":
    B, T, S_ENC, D, H, F = 2, 8, 8, 32, 4, 64

    key = jax.random.PRNGKey(0)
    k_hs, k_enc, k_par = jax.random.split(key, 3)

    hidden_states = jax.random.normal(k_hs, (B, T, D), jnp.float32)
    encoder_hidden_states = jax.random.normal(k_enc, (B, S_ENC, D), jnp.float32)

    # shared additive attention masks (0 = attend, -1e9 = blocked), NOT
    # replicated per batch (they are broadcast by the BlockSpec index map).
    row = jnp.arange(T)[:, None]
    col = jnp.arange(T)[None, :]
    causal = jnp.where(col <= row, 0.0, -1e9).astype(jnp.float32)            # self_attn
    banded = jnp.where((col <= row) & (col >= row - 3), 0.0, -1e9).astype(jnp.float32)  # tg
    enc_attn_mask = jnp.zeros((T, S_ENC), jnp.float32)

    params = init_params(k_par, D, F)

    out, present_kv = bart_decoder_layer(
        hidden_states, (causal, banded),
        encoder_hidden_states, enc_attn_mask, params, num_heads=H)

    out = jax.block_until_ready(out)
    jax.tree_util.tree_map(jax.block_until_ready, present_kv)
    assert out.shape == (B, T, D)
    assert present_kv[0][0].shape == (B, H, T, D // H)
    assert present_kv[2].shape == (B, H, S_ENC, D // H)
    assert bool(jnp.all(jnp.isfinite(out.astype(jnp.float32))))
    print("KERNEL_OK")
</pallas_src>

<mosaic_0001>
module attributes {stable_mosaic.version = 11 : i64} {
  func.func @kernel(%arg0: i32, %arg1: i32, %arg2: memref<1x8x32xbf16, #tpu.memory_space<vmem>>, %arg3: memref<1x8x8xf32, #tpu.memory_space<vmem>>, %arg4: memref<1x8x8xf32, #tpu.memory_space<vmem>>, %arg5: memref<1x32x24xbf16, #tpu.memory_space<vmem>>, %arg6: memref<1x1x24xf32, #tpu.memory_space<vmem>>, %arg7: memref<1x1x24xf32, #tpu.memory_space<vmem>>, %arg8: memref<1x8x32xbf16, #tpu.memory_space<vmem>>, %arg9: memref<1x8x32xbf16, #tpu.memory_space<vmem>>, %arg10: memref<1x32xf32, #tpu.memory_space<vmem>>, %arg11: memref<1x32xf32, #tpu.memory_space<vmem>>, %arg12: memref<1x32xf32, #tpu.memory_space<vmem>>, %arg13: memref<1x8x32xbf16, #tpu.memory_space<vmem>>, %arg14: memref<1x1x8x8xbf16, #tpu.memory_space<vmem>>, %arg15: memref<1x1x8x8xbf16, #tpu.memory_space<vmem>>, %arg16: memref<1x1x8x8xbf16, #tpu.memory_space<vmem>>, %arg17: memref<1x1x8x8xbf16, #tpu.memory_space<vmem>>, %arg18: memref<8x32xf32, #tpu.memory_space<vmem>>) attributes {dimension_semantics = [#tpu.dimension_semantics<parallel>, #tpu.dimension_semantics<arbitrary>], iteration_bounds = array<i64: 2, 4>, scalar_prefetch = 0 : i64, scratch_operands = 1 : i64, tpu.core_type = #tpu.core_type<tc>, window_params = [{transform_indices = @transform_0, window_bounds = array<i64: 1, 8, 32>}, {pipeline_mode = #tpu.pipeline_mode<synchronous>, transform_indices = @transform_1, window_bounds = array<i64: 1, 8, 8>}, {pipeline_mode = #tpu.pipeline_mode<synchronous>, transform_indices = @transform_2, window_bounds = array<i64: 1, 8, 8>}, {transform_indices = @transform_3, window_bounds = array<i64: 1, 32, 24>}, {transform_indices = @transform_4, window_bounds = array<i64: 1, 1, 24>}, {transform_indices = @transform_5, window_bounds = array<i64: 1, 1, 24>}, {transform_indices = @transform_6, window_bounds = array<i64: 1, 8, 32>}, {transform_indices = @transform_7, window_bounds = array<i64: 1, 8, 32>}, {pipeline_mode = #tpu.pipeline_mode<synchronous>, transform_indices = @transform_8, window_bounds = array<i64: 1, 32>}, {pipeline_mode = #tpu.pipeline_mode<synchronous>, transform_indices = @transform_9, window_bounds = array<i64: 1, 32>}, {pipeline_mode = #tpu.pipeline_mode<synchronous>, transform_indices = @transform_10, window_bounds = array<i64: 1, 32>}, {transform_indices = @transform_11, window_bounds = array<i64: 1, 8, 32>}, {transform_indices = @transform_12, window_bounds = array<i64: 1, 1, 8, 8>}, {transform_indices = @transform_13, window_bounds = array<i64: 1, 1, 8, 8>}, {transform_indices = @transform_14, window_bounds = array<i64: 1, 1, 8, 8>}, {transform_indices = @transform_15, window_bounds = array<i64: 1, 1, 8, 8>}]} {
    %c0_i32 = arith.constant 0 : i32
    %0 = arith.cmpi eq, %arg1, %c0_i32 : i32
    %1 = arith.extui %0 : i1 to i32
    %c0_i32_0 = arith.constant 0 : i32
    %2 = arith.cmpi ne, %1, %c0_i32_0 : i32
    scf.if %2 {
      %cst_55 = arith.constant 0.000000e+00 : f32
      %107 = vector.broadcast %cst_55 : f32 to vector<8x32xf32>
      %c0_56 = arith.constant 0 : index
      %c0_57 = arith.constant 0 : index
      %108 = vector.load %arg18[%c0_56, %c0_57] : memref<8x32xf32, #tpu.memory_space<vmem>>, vector<8x32xf32>
      tpu.vector_store %arg18[%c0_56, %c0_57], %107 {strides = array<i32>} : memref<8x32xf32, #tpu.memory_space<vmem>>, vector<8x32xf32>,
    } else {
    }
    %c0 = arith.constant 0 : index
    %c0_1 = arith.constant 0 : index
    %c0_2 = arith.constant 0 : index
    %3 = vector.load %arg2[%c0, %c0_1, %c0_2] : memref<1x8x32xbf16, #tpu.memory_space<vmem>>, vector<1x8x32xbf16>
    %4 = vector.shape_cast %3 : vector<1x8x32xbf16> to vector<8x32xbf16>
    %c0_3 = arith.constant 0 : index
    %c0_4 = arith.constant 0 : index
    %c0_5 = arith.constant 0 : index
    %5 = vector.load %arg3[%c0_3, %c0_4, %c0_5] : memref<1x8x8xf32, #tpu.memory_space<vmem>>, vector<1x8x8xf32>
    %6 = vector.shape_cast %5 : vector<1x8x8xf32> to vector<8x8xf32>
    %c0_6 = arith.constant 0 : index
    %c0_7 = arith.constant 0 : index
    %c0_8 = arith.constant 0 : index
    %7 = vector.load %arg4[%c0_6, %c0_7, %c0_8] : memref<1x8x8xf32, #tpu.memory_space<vmem>>, vector<1x8x8xf32>
    %8 = vector.shape_cast %7 : vector<1x8x8xf32> to vector<8x8xf32>
    %c0_9 = arith.constant 0 : index
    %c0_10 = arith.constant 0 : index
    %c0_11 = arith.constant 0 : index
    %9 = vector.load %arg5[%c0_9, %c0_10, %c0_11] : memref<1x32x24xbf16, #tpu.memory_space<vmem>>, vector<1x32x24xbf16>
    %10 = vector.shape_cast %9 : vector<1x32x24xbf16> to vector<32x24xbf16>
    %cst = arith.constant dense<0.000000e+00> : vector<8x24xf32>
    %11 = tpu.matmul %4, %10, %cst {dimension_numbers = #tpu.dot_dimension_numbers<[1], [0], [0], [1], [0, 0, 1, 1], [], []>} : vector<8x32xbf16>, vector<32x24xbf16>, vector<8x24xf32> -> vector<8x24xf32>
    %c0_12 = arith.constant 0 : index
    %c0_13 = arith.constant 0 : index
    %c0_14 = arith.constant 0 : index
    %12 = vector.load %arg6[%c0_12, %c0_13, %c0_14] : memref<1x1x24xf32, #tpu.memory_space<vmem>>, vector<1x1x24xf32>
    %13 = vector.shape_cast %12 : vector<1x1x24xf32> to vector<1x24xf32>
    %c0_15 = arith.constant 0 : index
    %c0_16 = arith.constant 0 : index
    %c0_17 = arith.constant 0 : index
    %14 = vector.load %arg7[%c0_15, %c0_16, %c0_17] : memref<1x1x24xf32, #tpu.memory_space<vmem>>, vector<1x1x24xf32>
    %15 = vector.shape_cast %14 : vector<1x1x24xf32> to vector<1x24xf32>
    %16 = vector.extract_strided_slice %11 {offsets = [0, 0], sizes = [8, 8], strides = [1, 1]} : vector<8x24xf32> to vector<8x8xf32>
    %17 = vector.extract_strided_slice %13 {offsets = [0, 0], sizes = [1, 8], strides = [1, 1]} : vector<1x24xf32> to vector<1x8xf32>
    %18 = vector.broadcast %17 : vector<1x8xf32> to vector<8x8xf32>
    %19 = arith.addf %16, %18 : vector<8x8xf32>
    %20 = vector.extract_strided_slice %11 {offsets = [0, 8], sizes = [8, 8], strides = [1, 1]} : vector<8x24xf32> to vector<8x8xf32>
    %21 = vector.extract_strided_slice %13 {offsets = [0, 8], sizes = [1, 8], strides = [1, 1]} : vector<1x24xf32> to vector<1x8xf32>
    %22 = vector.broadcast %21 : vector<1x8xf32> to vector<8x8xf32>
    %23 = arith.addf %20, %22 : vector<8x8xf32>
    %24 = vector.extract_strided_slice %11 {offsets = [0, 16], sizes = [8, 8], strides = [1, 1]} : vector<8x24xf32> to vector<8x8xf32>
    %25 = vector.extract_strided_slice %13 {offsets = [0, 16], sizes = [1, 8], strides = [1, 1]} : vector<1x24xf32> to vector<1x8xf32>
    %26 = vector.broadcast %25 : vector<1x8xf32> to vector<8x8xf32>
    %27 = arith.addf %24, %26 : vector<8x8xf32>
    %28 = vector.extract_strided_slice %11 {offsets = [0, 0], sizes = [8, 8], strides = [1, 1]} : vector<8x24xf32> to vector<8x8xf32>
    %29 = vector.extract_strided_slice %15 {offsets = [0, 0], sizes = [1, 8], strides = [1, 1]} : vector<1x24xf32> to vector<1x8xf32>
    %30 = vector.broadcast %29 : vector<1x8xf32> to vector<8x8xf32>
    %31 = arith.addf %28, %30 : vector<8x8xf32>
    %32 = vector.extract_strided_slice %11 {offsets = [0, 8], sizes = [8, 8], strides = [1, 1]} : vector<8x24xf32> to vector<8x8xf32>
    %33 = vector.extract_strided_slice %15 {offsets = [0, 8], sizes = [1, 8], strides = [1, 1]} : vector<1x24xf32> to vector<1x8xf32>
    %34 = vector.broadcast %33 : vector<1x8xf32> to vector<8x8xf32>
    %35 = arith.addf %32, %34 : vector<8x8xf32>
    %36 = vector.extract_strided_slice %11 {offsets = [0, 16], sizes = [8, 8], strides = [1, 1]} : vector<8x24xf32> to vector<8x8xf32>
    %37 = vector.extract_strided_slice %15 {offsets = [0, 16], sizes = [1, 8], strides = [1, 1]} : vector<1x24xf32> to vector<1x8xf32>
    %38 = vector.broadcast %37 : vector<1x8xf32> to vector<8x8xf32>
    %39 = arith.addf %36, %38 : vector<8x8xf32>
    %40 = arith.truncf %23 : vector<8x8xf32> to vector<8x8xbf16>
    %c0_18 = arith.constant 0 : index
    %c0_19 = arith.constant 0 : index
    %c0_20 = arith.constant 0 : index
    %c0_21 = arith.constant 0 : index
    %41 = vector.load %arg14[%c0_18, %c0_19, %c0_20, %c0_21] : memref<1x1x8x8xbf16, #tpu.memory_space<vmem>>, vector<1x1x8x8xbf16>
    %42 = vector.shape_cast %41 : vector<1x1x8x8xbf16> to vector<8x8xbf16>
    %43 = vector.shape_cast %40 : vector<8x8xbf16> to vector<1x1x8x8xbf16>
    tpu.vector_store %arg14[%c0_18, %c0_19, %c0_20, %c0_21], %43 {strides = array<i32>} : memref<1x1x8x8xbf16, #tpu.memory_space<vmem>>, vector<1x1x8x8xbf16>,
    %44 = arith.truncf %27 : vector<8x8xf32> to vector<8x8xbf16>
    %c0_22 = arith.constant 0 : index
    %c0_23 = arith.constant 0 : index
    %c0_24 = arith.constant 0 : index
    %c0_25 = arith.constant 0 : index
    %45 = vector.load %arg15[%c0_22, %c0_23, %c0_24, %c0_25] : memref<1x1x8x8xbf16, #tpu.memory_space<vmem>>, vector<1x1x8x8xbf16>
    %46 = vector.shape_cast %45 : vector<1x1x8x8xbf16> to vector<8x8xbf16>
    %47 = vector.shape_cast %44 : vector<8x8xbf16> to vector<1x1x8x8xbf16>
    tpu.vector_store %arg15[%c0_22, %c0_23, %c0_24, %c0_25], %47 {strides = array<i32>} : memref<1x1x8x8xbf16, #tpu.memory_space<vmem>>, vector<1x1x8x8xbf16>,
    %48 = arith.truncf %35 : vector<8x8xf32> to vector<8x8xbf16>
    %c0_26 = arith.constant 0 : index
    %c0_27 = arith.constant 0 : index
    %c0_28 = arith.constant 0 : index
    %c0_29 = arith.constant 0 : index
    %49 = vector.load %arg16[%c0_26, %c0_27, %c0_28, %c0_29] : memref<1x1x8x8xbf16, #tpu.memory_space<vmem>>, vector<1x1x8x8xbf16>
    %50 = vector.shape_cast %49 : vector<1x1x8x8xbf16> to vector<8x8xbf16>
    %51 = vector.shape_cast %48 : vector<8x8xbf16> to vector<1x1x8x8xbf16>
    tpu.vector_store %arg16[%c0_26, %c0_27, %c0_28, %c0_29], %51 {strides = array<i32>} : memref<1x1x8x8xbf16, #tpu.memory_space<vmem>>, vector<1x1x8x8xbf16>,
    %52 = arith.truncf %39 : vector<8x8xf32> to vector<8x8xbf16>
    %c0_30 = arith.constant 0 : index
    %c0_31 = arith.constant 0 : index
    %c0_32 = arith.constant 0 : index
    %c0_33 = arith.constant 0 : index
    %53 = vector.load %arg17[%c0_30, %c0_31, %c0_32, %c0_33] : memref<1x1x8x8xbf16, #tpu.memory_space<vmem>>, vector<1x1x8x8xbf16>
    %54 = vector.shape_cast %53 : vector<1x1x8x8xbf16> to vector<8x8xbf16>
    %55 = vector.shape_cast %52 : vector<8x8xbf16> to vector<1x1x8x8xbf16>
    tpu.vector_store %arg17[%c0_30, %c0_31, %c0_32, %c0_33], %55 {strides = array<i32>} : memref<1x1x8x8xbf16, #tpu.memory_space<vmem>>, vector<1x1x8x8xbf16>,
    %56 = arith.truncf %19 : vector<8x8xf32> to vector<8x8xbf16>
    %57 = arith.truncf %23 : vector<8x8xf32> to vector<8x8xbf16>
    %cst_34 = arith.constant dense<0.000000e+00> : vector<8x8xf32>
    %58 = tpu.matmul %56, %57, %cst_34 {dimension_numbers = #tpu.dot_dimension_numbers<[1], [1], [0], [0], [0, 0, 1, 0], [], []>} : vector<8x8xbf16>, vector<8x8xbf16>, vector<8x8xf32> -> vector<8x8xf32>
    %59 = arith.addf %58, %6 : vector<8x8xf32>
    %cst_35 = arith.constant dense<0xFF800000> : vector<8xf32>
    %60 = vector.multi_reduction <maximumf>, %59, %cst_35 [1] : vector<8x8xf32> to vector<8xf32>
    %61 = vector.shape_cast %60 : vector<8xf32> to vector<8x1xf32>
    %62 = vector.broadcast %61 : vector<8x1xf32> to vector<8x8xf32>
    %63 = arith.subf %59, %62 : vector<8x8xf32>
    %64 = arith.truncf %63 : vector<8x8xf32> to vector<8x8xbf16>
    %65 = math.exp %64 : vector<8x8xbf16>
    %66 = arith.extf %65 : vector<8x8xbf16> to vector<8x8xf32>
    %cst_36 = arith.constant dense<0.000000e+00> : vector<8xf32>
    %67 = vector.multi_reduction <add>, %66, %cst_36 [1] : vector<8x8xf32> to vector<8xf32>
    %68 = vector.shape_cast %67 : vector<8xf32> to vector<8x1xf32>
    %69 = arith.truncf %27 : vector<8x8xf32> to vector<8x8xbf16>
    %cst_37 = arith.constant dense<0.000000e+00> : vector<8x8xf32>
    %70 = tpu.matmul %65, %69, %cst_37 {dimension_numbers = #tpu.dot_dimension_numbers<[1], [0], [0], [1], [0, 0, 1, 1], [], []>} : vector<8x8xbf16>, vector<8x8xbf16>, vector<8x8xf32> -> vector<8x8xf32>
    %71 = tpu.reciprocal %68 {approx = true} : vector<8x1xf32> -> vector<8x1xf32>
    %72 = vector.broadcast %71 : vector<8x1xf32> to vector<8x8xf32>
    %73 = arith.mulf %70, %72 : vector<8x8xf32>
    %74 = arith.truncf %31 : vector<8x8xf32> to vector<8x8xbf16>
    %75 = arith.truncf %35 : vector<8x8xf32> to vector<8x8xbf16>
    %cst_38 = arith.constant dense<0.000000e+00> : vector<8x8xf32>
    %76 = tpu.matmul %74, %75, %cst_38 {dimension_numbers = #tpu.dot_dimension_numbers<[1], [1], [0], [0], [0, 0, 1, 0], [], []>} : vector<8x8xbf16>, vector<8x8xbf16>, vector<8x8xf32> -> vector<8x8xf32>
    %77 = arith.addf %76, %8 : vector<8x8xf32>
    %cst_39 = arith.constant dense<0xFF800000> : vector<8xf32>
    %78 = vector.multi_reduction <maximumf>, %77, %cst_39 [1] : vector<8x8xf32> to vector<8xf32>
    %79 = vector.shape_cast %78 : vector<8xf32> to vector<8x1xf32>
    %80 = vector.broadcast %79 : vector<8x1xf32> to vector<8x8xf32>
    %81 = arith.subf %77, %80 : vector<8x8xf32>
    %82 = arith.truncf %81 : vector<8x8xf32> to vector<8x8xbf16>
    %83 = math.exp %82 : vector<8x8xbf16>
    %84 = arith.extf %83 : vector<8x8xbf16> to vector<8x8xf32>
    %cst_40 = arith.constant dense<0.000000e+00> : vector<8xf32>
    %85 = vector.multi_reduction <add>, %84, %cst_40 [1] : vector<8x8xf32> to vector<8xf32>
    %86 = vector.shape_cast %85 : vector<8xf32> to vector<8x1xf32>
    %87 = arith.truncf %39 : vector<8x8xf32> to vector<8x8xbf16>
    %cst_41 = arith.constant dense<0.000000e+00> : vector<8x8xf32>
    %88 = tpu.matmul %83, %87, %cst_41 {dimension_numbers = #tpu.dot_dimension_numbers<[1], [0], [0], [1], [0, 0, 1, 1], [], []>} : vector<8x8xbf16>, vector<8x8xbf16>, vector<8x8xf32> -> vector<8x8xf32>
    %89 = tpu.reciprocal %86 {approx = true} : vector<8x1xf32> -> vector<8x1xf32>
    %90 = vector.broadcast %89 : vector<8x1xf32> to vector<8x8xf32>
    %91 = arith.mulf %88, %90 : vector<8x8xf32>
    %c0_42 = arith.constant 0 : index
    %c0_43 = arith.constant 0 : index
    %92 = vector.load %arg18[%c0_42, %c0_43] : memref<8x32xf32, #tpu.memory_space<vmem>>, vector<8x32xf32>
    %93 = arith.truncf %73 : vector<8x8xf32> to vector<8x8xbf16>
    %c0_44 = arith.constant 0 : index
    %c0_45 = arith.constant 0 : index
    %c0_46 = arith.constant 0 : index
    %94 = vector.load %arg8[%c0_44, %c0_45, %c0_46] : memref<1x8x32xbf16, #tpu.memory_space<vmem>>, vector<1x8x32xbf16>
    %95 = vector.shape_cast %94 : vector<1x8x32xbf16> to vector<8x32xbf16>
    %cst_47 = arith.constant dense<0.000000e+00> : vector<8x32xf32>
    %96 = tpu.matmul %93, %95, %cst_47 {dimension_numbers = #tpu.dot_dimension_numbers<[1], [0], [0], [1], [0, 0, 1, 1], [], []>} : vector<8x8xbf16>, vector<8x32xbf16>, vector<8x32xf32> -> vector<8x32xf32>
    %97 = arith.truncf %91 : vector<8x8xf32> to vector<8x8xbf16>
    %c0_48 = arith.constant 0 : index
    %c0_49 = arith.constant 0 : index
    %c0_50 = arith.constant 0 : index
    %98 = vector.load %arg9[%c0_48, %c0_49, %c0_50] : memref<1x8x32xbf16, #tpu.memory_space<vmem>>, vector<1x8x32xbf16>
    %99 = vector.shape_cast %98 : vector<1x8x32xbf16> to vector<8x32xbf16>
    %cst_51 = arith.constant dense<0.000000e+00> : vector<8x32xf32>
    %100 = tpu.matmul %97, %99, %cst_51 {dimension_numbers = #tpu.dot_dimension_numbers<[1], [0], [0], [1], [0, 0, 1, 1], [], []>} : vector<8x8xbf16>, vector<8x32xbf16>, vector<8x32xf32> -> vector<8x32xf32>
    %101 = arith.addf %96, %100 : vector<8x32xf32>
    %102 = arith.addf %92, %101 : vector<8x32xf32>
    %c0_52 = arith.constant 0 : index
    %c0_53 = arith.constant 0 : index
    %103 = vector.load %arg18[%c0_52, %c0_53] : memref<8x32xf32, #tpu.memory_space<vmem>>, vector<8x32xf32>
    tpu.vector_store %arg18[%c0_52, %c0_53], %102 {strides = array<i32>} : memref<8x32xf32, #tpu.memory_space<vmem>>, vector<8x32xf32>,
    %c3_i32 = arith.constant 3 : i32
    %104 = arith.cmpi eq, %arg1, %c3_i32 : i32
    %105 = arith.extui %104 : i1 to i32
    %c0_i32_54 = arith.constant 0 : i32
    %106 = arith.cmpi ne, %105, %c0_i32_54 : i32
    scf.if %106 {
      %c0_55 = arith.constant 0 : index
      %c0_56 = arith.constant 0 : index
      %c0_57 = arith.constant 0 : index
      %107 = vector.load %arg2[%c0_55, %c0_56, %c0_57] : memref<1x8x32xbf16, #tpu.memory_space<vmem>>, vector<1x8x32xbf16>
      %108 = vector.shape_cast %107 : vector<1x8x32xbf16> to vector<8x32xbf16>
      %109 = arith.extf %108 : vector<8x32xbf16> to vector<8x32xf32>
      %c0_58 = arith.constant 0 : index
      %c0_59 = arith.constant 0 : index
      %110 = vector.load %arg18[%c0_58, %c0_59] : memref<8x32xf32, #tpu.memory_space<vmem>>, vector<8x32xf32>
      %111 = arith.addf %109, %110 : vector<8x32xf32>
      %c0_60 = arith.constant 0 : index
      %c0_61 = arith.constant 0 : index
      %112 = vector.load %arg10[%c0_60, %c0_61] : memref<1x32xf32, #tpu.memory_space<vmem>>, vector<1x32xf32>
      %113 = vector.broadcast %112 : vector<1x32xf32> to vector<8x32xf32>
      %114 = arith.addf %111, %113 : vector<8x32xf32>
      %c0_62 = arith.constant 0 : index
      %c0_63 = arith.constant 0 : index
      %115 = vector.load %arg11[%c0_62, %c0_63] : memref<1x32xf32, #tpu.memory_space<vmem>>, vector<1x32xf32>
      %c0_64 = arith.constant 0 : index
      %c0_65 = arith.constant 0 : index
      %116 = vector.load %arg12[%c0_64, %c0_65] : memref<1x32xf32, #tpu.memory_space<vmem>>, vector<1x32xf32>
      %cst_66 = arith.constant dense<0.000000e+00> : vector<8xf32>
      %117 = vector.multi_reduction <add>, %114, %cst_66 [1] : vector<8x32xf32> to vector<8xf32>
      %118 = vector.shape_cast %117 : vector<8xf32> to vector<8x1xf32>
      %cst_67 = arith.constant 3.200000e+01 : f32
      %119 = vector.broadcast %cst_67 : f32 to vector<8x1xf32>
      %120 = arith.divf %118, %119 : vector<8x1xf32>
      %121 = vector.broadcast %120 : vector<8x1xf32> to vector<8x32xf32>
      %122 = arith.subf %114, %121 : vector<8x32xf32>
      %123 = arith.mulf %122, %122 : vector<8x32xf32>
      %cst_68 = arith.constant dense<0.000000e+00> : vector<8xf32>
      %124 = vector.multi_reduction <add>, %123, %cst_68 [1] : vector<8x32xf32> to vector<8xf32>
      %125 = vector.shape_cast %124 : vector<8xf32> to vector<8x1xf32>
      %cst_69 = arith.constant 3.200000e+01 : f32
      %126 = vector.broadcast %cst_69 : f32 to vector<8x1xf32>
      %127 = arith.divf %125, %126 : vector<8x1xf32>
      %cst_70 = arith.constant 9.99999974E-6 : f32
      %128 = vector.broadcast %cst_70 : f32 to vector<8x1xf32>
      %129 = arith.addf %127, %128 : vector<8x1xf32>
      %130 = math.rsqrt %129 : vector<8x1xf32>
      %131 = vector.broadcast %130 : vector<8x1xf32> to vector<8x32xf32>
      %132 = arith.mulf %122, %131 : vector<8x32xf32>
      %133 = vector.broadcast %115 : vector<1x32xf32> to vector<8x32xf32>
      %134 = arith.mulf %132, %133 : vector<8x32xf32>
      %135 = vector.broadcast %116 : vector<1x32xf32> to vector<8x32xf32>
      %136 = arith.addf %134, %135 : vector<8x32xf32>
      %137 = arith.truncf %136 : vector<8x32xf32> to vector<8x32xbf16>
      %c0_71 = arith.constant 0 : index
      %c0_72 = arith.constant 0 : index
      %c0_73 = arith.constant 0 : index
      %138 = vector.load %arg13[%c0_71, %c0_72, %c0_73] : memref<1x8x32xbf16, #tpu.memory_space<vmem>>, vector<1x8x32xbf16>
      %139 = vector.shape_cast %138 : vector<1x8x32xbf16> to vector<8x32xbf16>
      %140 = vector.shape_cast %137 : vector<8x32xbf16> to vector<1x8x32xbf16>
      tpu.vector_store %arg13[%c0_71, %c0_72, %c0_73], %140 {strides = array<i32>} : memref<1x8x32xbf16, #tpu.memory_space<vmem>>, vector<1x8x32xbf16>,
    } else {
    }
    return
  }
  func.func @transform_0(%arg0: i32, %arg1: i32) -> (i32, i32, i32) {
    %c0_i32 = arith.constant 0 : i32
    %c0_i32_0 = arith.constant 0 : i32
    %c0_i32_1 = arith.constant 0 : i32
    return %arg0, %c0_i32, %c0_i32_0 : i32, i32, i32
  }
  func.func @transform_1(%arg0: i32, %arg1: i32) -> (i32, i32, i32) {
    %c0_i32 = arith.constant 0 : i32
    %c0_i32_0 = arith.constant 0 : i32
    %c0_i32_1 = arith.constant 0 : i32
    %c0_i32_2 = arith.constant 0 : i32
    return %c0_i32, %c0_i32_0, %c0_i32_1 : i32, i32, i32
  }
  func.func @transform_2(%arg0: i32, %arg1: i32) -> (i32, i32, i32) {
    %c0_i32 = arith.constant 0 : i32
    %c0_i32_0 = arith.constant 0 : i32
    %c0_i32_1 = arith.constant 0 : i32
    %c0_i32_2 = arith.constant 0 : i32
    return %c0_i32, %c0_i32_0, %c0_i32_1 : i32, i32, i32
  }
  func.func @transform_3(%arg0: i32, %arg1: i32) -> (i32, i32, i32) {
    %c0_i32 = arith.constant 0 : i32
    %c0_i32_0 = arith.constant 0 : i32
    %c0_i32_1 = arith.constant 0 : i32
    return %arg1, %c0_i32, %c0_i32_0 : i32, i32, i32
  }
  func.func @transform_4(%arg0: i32, %arg1: i32) -> (i32, i32, i32) {
    %c0_i32 = arith.constant 0 : i32
    %c0_i32_0 = arith.constant 0 : i32
    %c0_i32_1 = arith.constant 0 : i32
    return %arg1, %c0_i32, %c0_i32_0 : i32, i32, i32
  }
  func.func @transform_5(%arg0: i32, %arg1: i32) -> (i32, i32, i32) {
    %c0_i32 = arith.constant 0 : i32
    %c0_i32_0 = arith.constant 0 : i32
    %c0_i32_1 = arith.constant 0 : i32
    return %arg1, %c0_i32, %c0_i32_0 : i32, i32, i32
  }
  func.func @transform_6(%arg0: i32, %arg1: i32) -> (i32, i32, i32) {
    %c0_i32 = arith.constant 0 : i32
    %c0_i32_0 = arith.constant 0 : i32
    %c0_i32_1 = arith.constant 0 : i32
    return %arg1, %c0_i32, %c0_i32_0 : i32, i32, i32
  }
  func.func @transform_7(%arg0: i32, %arg1: i32) -> (i32, i32, i32) {
    %c0_i32 = arith.constant 0 : i32
    %c0_i32_0 = arith.constant 0 : i32
    %c0_i32_1 = arith.constant 0 : i32
    return %arg1, %c0_i32, %c0_i32_0 : i32, i32, i32
  }
  func.func @transform_8(%arg0: i32, %arg1: i32) -> (i32, i32) {
    %c0_i32 = arith.constant 0 : i32
    %c0_i32_0 = arith.constant 0 : i32
    %c0_i32_1 = arith.constant 0 : i32
    return %c0_i32, %c0_i32_0 : i32, i32
  }
  func.func @transform_9(%arg0: i32, %arg1: i32) -> (i32, i32) {
    %c0_i32 = arith.constant 0 : i32
    %c0_i32_0 = arith.constant 0 : i32
    %c0_i32_1 = arith.constant 0 : i32
    return %c0_i32, %c0_i32_0 : i32, i32
  }
  func.func @transform_10(%arg0: i32, %arg1: i32) -> (i32, i32) {
    %c0_i32 = arith.constant 0 : i32
    %c0_i32_0 = arith.constant 0 : i32
    %c0_i32_1 = arith.constant 0 : i32
    return %c0_i32, %c0_i32_0 : i32, i32
  }
  func.func @transform_11(%arg0: i32, %arg1: i32) -> (i32, i32, i32) {
    %c0_i32 = arith.constant 0 : i32
    %c0_i32_0 = arith.constant 0 : i32
    %c0_i32_1 = arith.constant 0 : i32
    return %arg0, %c0_i32, %c0_i32_0 : i32, i32, i32
  }
  func.func @transform_12(%arg0: i32, %arg1: i32) -> (i32, i32, i32, i32) {
    %c0_i32 = arith.constant 0 : i32
    %c0_i32_0 = arith.constant 0 : i32
    %c0_i32_1 = arith.constant 0 : i32
    return %arg0, %arg1, %c0_i32, %c0_i32_0 : i32, i32, i32, i32
  }
  func.func @transform_13(%arg0: i32, %arg1: i32) -> (i32, i32, i32, i32) {
    %c0_i32 = arith.constant 0 : i32
    %c0_i32_0 = arith.constant 0 : i32
    %c0_i32_1 = arith.constant 0 : i32
    return %arg0, %arg1, %c0_i32, %c0_i32_0 : i32, i32, i32, i32
  }
  func.func @transform_14(%arg0: i32, %arg1: i32) -> (i32, i32, i32, i32) {
    %c0_i32 = arith.constant 0 : i32
    %c0_i32_0 = arith.constant 0 : i32
    %c0_i32_1 = arith.constant 0 : i32
    return %arg0, %arg1, %c0_i32, %c0_i32_0 : i32, i32, i32, i32
  }
  func.func @transform_15(%arg0: i32, %arg1: i32) -> (i32, i32, i32, i32) {
    %c0_i32 = arith.constant 0 : i32
    %c0_i32_0 = arith.constant 0 : i32
    %c0_i32_1 = arith.constant 0 : i32
    return %arg0, %arg1, %c0_i32, %c0_i32_0 : i32, i32, i32, i32
  }
}

</mosaic_0001>

<bundles_post_ra>
// kernel: tpu_custom_call.1
= control target key start
LH: loop header
LB: loop body
LE: loop exit
PB: predicated region body
PF: predicated region fallthrough
CT: control target
= control target key end

     0   :  { %s2158_s0 = inlined_call_operand.vmem [shape: bf16[2,8,32], index: 0, kind: input, shape index: {}]   ;;  %s2159_s1 = inlined_call_operand.vmem [shape: f32[1,8,8], index: 1, kind: input, shape index: {}]   ;;  %s2160_s2 = inlined_call_operand.vmem [shape: f32[1,8,8], index: 2, kind: input, shape index: {}]   ;;  %s2161_s3 = inlined_call_operand.vmem [shape: bf16[4,32,24], index: 3, kind: input, shape index: {}]   ;;  %s2162_s4 = inlined_call_operand.vmem [shape: f32[4,1,24], index: 4, kind: input, shape index: {}]   ;;  %s2163_s5 = inlined_call_operand.vmem [shape: f32[4,1,24], index: 5, kind: input, shape index: {}]   ;;  %s2164_s6 = inlined_call_operand.vmem [shape: bf16[4,8,32], index: 6, kind: input, shape index: {}]   ;;  %s2165_s7 = inlined_call_operand.vmem [shape: bf16[4,8,32], index: 7, kind: input, shape index: {}]   ;;  %s2166_s8 = inlined_call_operand.vmem [shape: f32[1,32], index: 8, kind: input, shape index: {}]   ;;  %s2167_s9 = inlined_call_operand.vmem [shape: f32[1,32], index: 9, kind: input, shape index: {}]   ;;  %s2168_s10 = inlined_call_operand.vmem [shape: f32[1,32], index: 10, kind: input, shape index: {}]   ;;  %s2169_s11 = inlined_call_operand.hbm [shape: bf16[2,8,32], index: 11, kind: output, shape index: {0}]   ;;  %s2170_s12 = inlined_call_operand.hbm [shape: bf16[2,4,8,8], index: 12, kind: output, shape index: {1}]   ;;  %s2171_s13 = inlined_call_operand.hbm [shape: bf16[2,4,8,8], index: 13, kind: output, shape index: {2}]   ;;  %s2172_s14 = inlined_call_operand.hbm [shape: bf16[2,4,8,8], index: 14, kind: output, shape index: {3}]   ;;  %s2173_s15 = inlined_call_operand.hbm [shape: bf16[2,4,8,8], index: 15, kind: output, shape index: {4}]  }
   0x1   :  { %2205 = sst [smem:[#allocation30_spill]] %s2158_s0 }
   0x2   :  { %2206 = sst [smem:[#allocation31_spill]] %s2159_s1 }
   0x3   :  { %2207 = sst [smem:[#allocation32_spill]] %s2160_s2 }
   0x4   :  { %2208 = sst [smem:[#allocation33_spill]] %s2161_s3 }
   0x5   :  { %2209 = sst [smem:[#allocation34_spill]] %s2167_s9 }
   0x6   :  { %2210 = sst [smem:[#allocation35_spill]] %s2168_s10 }
   0x7   :  { %2211 = sst [smem:[#allocation36_spill]] %s2169_s11 }
   0x8   :  { %2212 = sst [smem:[#allocation37_spill]] %s2170_s12 }
   0x9   :  { %2213 = sst [smem:[#allocation38_spill]] %s2171_s13 }
   0xa   :  { %2214 = sst [smem:[#allocation39_spill]] %s2172_s14 }
   0xb   :  { %2215 = sst [smem:[#allocation40_spill]] %s2173_s15 }
   0xc   :  { %21 = vsyncpa [#allocation4], 0 }
   0xd   :  { %23 = vsyncpa [#allocation4 + $0x1], 0 }
   0xe   :  { %24 = vsyncpa [#allocation6], 0 }
   0xf   :  { %26 = vsyncpa [#allocation6 + $0x1], 0 }
  0x10   :  { %27 = vsyncpa [#allocation9], 0 }
  0x11   :  { %29 = vsyncpa [#allocation9 + $0x1], 0  ;;  %s1790_s18 = smov 0   ;;  %s1792_s19 = smov 0  }
  0x12   :  { %s1794_s20 = smov 0   ;;  %s1796_s21 = smov 0  }
  0x13   :  { %s1798_s22 = smov 0   ;;  %s1800_s23 = smov 0  }
  0x14   :  { %s1802_s24 = smov 0   ;;  %s1804_s25 = smov 0  }
  0x15   :  { %s1806_s26 = smov 0   ;;  %s1808_s27 = smov 0  }
  0x16   :  { %s1810_s28 = smov 0  }
  0x17 LB: > { %2216 = sst [smem:[#allocation14_spill]] %s1668_s19  ;;  %s2177_s29 = sadd.s32 4294967295, %s1704_s28   ;;  %s1704_s28 = sphi %s1810_s28, %s35_s28   ;;  %s1700_s27 = sphi %s1808_s27, %s2278_s27   ;;  %s1696_s26 = sphi %s1806_s26, %s2277_s26   ;;  %s1692_s25 = sphi %s1804_s25, %s2276_s25   ;;  %s1688_s24 = sphi %s1802_s24, %s2275_s24   ;;  %s1684_s23 = sphi %s1800_s23, %s2274_s23   ;;  %s1680_s22 = sphi %s1798_s22, %s2273_s22   ;;  %s1676_s21 = sphi %s1796_s21, %s2272_s21   ;;  %s1672_s20 = sphi %s1794_s20, %s2271_s20   ;;  %s1668_s19 = sphi %s1792_s19, %s2270_s19   ;;  %s1664_s18 = sphi %s1790_s18, %s2269_s18  }
  0x18   : > { %2217 = sst [smem:[#allocation15_spill]] %s1672_s20  ;;  %s44_s16 = sadd.s32 1, %s1696_s26 }
  0x19   : > { %2218 = sst [smem:[#allocation16_spill]] %s1676_s21  ;;  %s47_s17 = sadd.s32 1, %s1700_s27 }
  0x1a   : > { %2219 = sst [smem:[#allocation17_spill]] %s1680_s22  ;;  %p45_p0 = scmp.ge.s32.totalorder %s44_s16, 4 }
  0x1b   : > { %2220 = sst [smem:[#allocation18_spill]] %s1684_s23  ;;  %s315_s15 = sadd.s32 1, %s1684_s23 }
  0x1c   : > { %2221 = sst [smem:[#allocation19_spill]] %s1692_s25  ;;  %p325_p1 = scmp.ne.s32.totalorder %s1684_s23, %s1680_s22 }
  0x1d   : > { %2222 = sst [smem:[#allocation20_spill]] %s1696_s26  ;;  %p1854_p2 = scmp.eq.s32.totalorder %s2177_s29, 7 }
  0x1e   : > { %2223 = sst [smem:[#allocation21_spill]] %s1700_s27  ;;  %s2280_s16 = smov (%p45_p0, %s44_s16), 0 }
  0x1f   : > { %2225 = sst [smem:[#allocation22_spill]] %s2280_s16  ;;  %s2282_s17 = smov (!%p45_p0, %s47_s17), %s1700_s27 }
  0x20   : > { %p1863_p3 = por %p1854_p2, %p325_p1  ;;  %p331_p4 = scmp.ne.s32.totalorder %s1680_s22, %s1676_s21 }
  0x21   : > { %p49_p5 = scmp.ge.s32.totalorder %s2282_s17, 2  ;;  %s2228_s11 = sadd.s32 4294967294, %s1704_s28  }
  0x22   : > { %s2226_s30 = scalar_select %p1863_p3, 1, 0 }
  0x23   : > { %p1871_p6 = scmp.eq.s32.totalorder %s2228_s11, 7  ;;  %s339_s14 = ssub.s32 %s1696_s26, %s2280_s16 }
  0x24   : > { %2227 = sst [smem:[#allocation23_spill]] %s2226_s30  ;;  %s343_s12 = sadd.s32 1, %s1672_s20 }
  0x25   : > { %s2284_s17 = smov (%p49_p5, %s2282_s17), 0  ;;  %p1882_p7 = por %p1871_p6, %p331_p4 }
  0x26   : > { %2230 = sst [smem:[#allocation24_spill]] %s2284_s17  ;;  %p353_p8 = scmp.ne.s32.totalorder %s1672_s20, %s1668_s19 }
  0x27   : > { %s2231_s30 = scalar_select %p1882_p7, 1, 0 }
  0x28   : > { %s312_s21 = ssub.s32 %s1700_s27, %s2284_s17  ;;  %p359_p9 = scmp.ne.s32.totalorder %s1668_s19, %s1664_s18 }
  0x29   : > { %2232 = sst [smem:[#allocation25_spill]] %s2231_s30  ;;  %p313_p10 = scmp.eq.s32.totalorder %s312_s21, 0 }
  0x2a   : > { %s340_s11 = sor.u32 %s339_s14, %s312_s21  ;;  %p1894_p12 = por %p353_p8, %p1854_p2 }
  0x2b   : > { %p341_p11 = scmp.eq.s32.totalorder %s340_s11, 0  ;;  %p1906_p13 = por %p359_p9, %p1871_p6 }
  0x2c   : > { %s2233_s10 = scalar_select %p1894_p12, 1, 0 }
  0x2d   : > { %s1899_s16 = scalar_select %p313_p10, %s1684_s23, %s315_s15  }
  0x2e   : > { %2234 = sst [smem:[#allocation26_spill]] %s2233_s10  ;;  %p1283_p0 = scmp.ge.s32.totalorder %s1704_s28, 1 }
  0x2f   : > { %2235 = sst [smem:[#allocation27_spill]] %s1899_s16  ;;  %p518_p1 = scmp.lt.s32.totalorder %s1704_s28, 9 }
  0x30   : > { %s1902_s26 = scalar_select %p341_p11, %s1672_s20, %s343_s12  }
  0x31   : > { %s2237_s9 = scalar_select %p1906_p13, 1, 0 }
  0x32   : > { %2236 = sst [smem:[#allocation28_spill]] %s1902_s26  ;;  %p519_p4 = pnand %p1283_p0, %p518_p1 }
  0x33   : > { %2238 = sst [smem:[#allocation29_spill]] %s2237_s9  ;;  %s2185_s13 = sand.u32 (!%p519_p4), 1, %s1680_s22  }
  0x34   : > { %522 = sbr.rel (%p519_p4) target bundleno = 1270 (0x4f6), region = 64  ;;  %s580_s14 = sand.u32 (!%p519_p4), 1, %s1668_s19  }
  0x35   : > { %s1916_s12 = sshll.u32 (!%p519_p4), %s2185_s13, 2  ;;  %s1918_s15 = sshll.u32 (!%p519_p4), %s580_s14, 2 }
  0x36   : > { %p604_p2 = scmp.lt.s32.totalorder (!%p519_p4), %s1692_s25, 1  ;;  %p608_p5 = scmp.lt.s32.totalorder (!%p519_p4), %s1688_s24, 3 }
  0x37   : > { %s2239_s0 = sld [smem:[#allocation30_spill]] (!%p519_p4)  ;;  %s2200_s27 = scalar_lea.vmem (!%p519_p4), [#allocation3], %s1916_s12 }
  0x38   : > { %s2240_s3 = sld [smem:[#allocation33_spill]] (!%p519_p4)  ;;  %s582_s16 = scalar_lea.vmem (!%p519_p4), [#allocation5], %s1918_s15 }
  0x39   : > { %s605_s18 = scalar_select %p604_p2, %s1692_s25, 1 }
  0x3a   : > { %s1924_s21 = scalar_select %p608_p5, %s1688_s24, 3 }
  0x3b   : > { %s1289_s29 = sshll.u32 %s605_s18, 2  ;;  %s2201_s20 = scalar_lea.vmem [#allocation8], %s1918_s15 }
  0x3c   : > { %s1327_s14 = sshll.u32 %s1924_s21, 4  ;;  %s615_s19 = scalar_lea.vmem %s2162_s4, %s1924_s21 }
  0x3d   : > { %s1929_s17 = scalar_lea.vmem %s2239_s0, %s1289_s29  ;;  %s618_s22 = scalar_lea.vmem %s2163_s5, %s1924_s21 }
  0x3e   : > { %s612_s23 = scalar_lea.vmem %s2240_s3, %s1327_s14  ;;  %s1292_s10 = sshll.u32 %s1924_s21, 2 }
  0x3f   : > { %s1947_s13 = scalar_lea.vmem %s2164_s6, %s1292_s10  ;;  %s1952_s0 = scalar_lea.vmem %s2165_s7, %s1292_s10 }
  0x40   : > { %s2199_s14 = scalar_lea.vmem [#allocation7], %s1918_s15  ;;  %s2198_s26 = scalar_lea.vmem [#allocation10], %s1918_s15 }
  0x41   : > { %p1294_p6 = scmp.ne.s32.totalorder %s1688_s24, 0 }
  0x43   : > { %631 = sbr.rel (%p1294_p6) target bundleno = 74 (0x4a), region = 68 }
  0x48   : > { %vm632_vm0 = vcmask 261120   ;;  %v1706_v0 = vmov 0.0  }
  0x49   : > { %633 = vst.msk [vmem:[#allocation2] sm:$0xff] %vm632_vm0, %v1706_v0 }
  0x4a PF: > { %v1329_v1 = vld [vmem:[%s612_s23 + $0x8] sm:$0xff]  ;;  %v1328_v2 = vld [vmem:[%s612_s23] sm:$0xff]  ;;  %vm653_vm1 = vcmask 261120   ;;  %s1707_s9 = smov 120   ;;  %vm705_vm2 = vcmask 64512   ;;  %s2241_s1 = sld [smem:[#allocation31_spill]] }
  0x4b   : > { %663 = vmatpush.bf16.msra.mxu0 %v1329_v1  ;;  %v634_v3 = vld [vmem:[%s1929_s17] sm:$0xf]  ;;  %s2242_s2 = sld [smem:[#allocation32_spill]]  ;;  %s1708_s25 = smov 112   ;;  %vm743_vm3 = vcmask 1043456   ;;  %vm685_vm4 = vcmask 60416  }
  0x4c   : > { %v1449_v4 = vld [vmem:[%s615_s19] ss:$0 sm:$0xff]  ;;  %p1310_p8 = scmp.ne.s32.totalorder %s1688_s24, 3 }
  0x4d   : > { %v1450_v5 = vld [vmem:[%s618_s22] ss:$0 sm:$0xff]  ;;  %s2243_s18 = sld [smem:[#allocation34_spill]] (!%p1310_p8) }
  0x4e   : > { %v823_v56 = vld [vmem:[%s1947_s13] sm:$0xf]  ;;  %s2244_s11 = sld [smem:[#allocation35_spill]] (!%p1310_p8) }
  0x4f   : > { %664 = vmatpush.bf16.msra.mxu0 %v1328_v2  ;;  %v849_v57 = vsel %vm743_vm3, %v823_v56, 0  ;;  %v825_v58 = vld [vmem:[%s1952_s0] sm:$0xf] }
  0x50   : > { %v635_v20 = vld [vmem:[%s2241_s1] sm:$0xff]  ;;  %v830_v59 = vsel %vm743_vm3, %v825_v58, 0 }
  0x51   : > { %v636_v25 = vld [vmem:[%s2242_s2] sm:$0xff] }
  0x52   : > { %1303 = vmatmul.msk.bf16.vlgmr.msra.gmra.mxu0 %vm653_vm1, %v634_v3 }
  0x53   : > { %839 = vmatpush.bf16.msrb.mxu0 %v830_v59 }
  0xcf   : > { %v666_v6 = vpop.f32.mrf.mxu0 }
  0xd0   : > { %v675_v7 = vadd.f32 %v1449_v4, %v666_v6  ;;  %v679_v8 = vadd.f32 %v1450_v5, %v666_v6 }
  0xd2   : > { %v680_v9 = vpack.c.bf16 %v675_v7, %v675_v7  ;;  %v691_v11 = vpack.c.bf16 %v679_v8, %v679_v8 }
  0xd4   : > { %v701_v10 = vunpack.c.l.b16 %v680_v9  ;;  %v762_v14 = vunpack.c.l.b16 %v691_v11 }
  0xd6   : > { %v702_v12 = vpack.c.b16 %v701_v10, %v701_v10  ;;  %v763_v15 = vpack.c.b16 %v762_v14, %v762_v14  ;;  %v821_v10 = vld [vmem:[#allocation2] sm:$0xff] }
  0xd7   : > { %v668_v13 = vpop.f32.mrf.mxu0 }
  0xd8   : > { %703 = vrot.lane.b32.xlu0 %v702_v12, %s1707_s9 }
  0xe0   : > { %764 = vrot.lane.b32.xlu0 %v763_v15, %s1707_s9 }
 0x14a   : > { %v704_v16 = vpop.permute.xlu0 %703 }
 0x14b   : > { %v710_v17 = vsel %vm705_vm2, %v704_v16, 0 }
 0x14c   : > { %719 = vmatpush.bf16.xpose.msra.mxu1 %v710_v17 }
 0x152   : > { %v765_v18 = vpop.permute.xlu0 %764 }
 0x153   : > { %1304 = vmatmul.msk.bf16.vlgmr.msra.gmra.mxu1 %vm705_vm2, %v680_v9  ;;  %v770_v19 = vsel %vm705_vm2, %v765_v18, 0 }
 0x154   : > { %779 = vmatpush.bf16.xpose.msra.mxu3 %v770_v19  ;;  %858 = vmatpush.bf16.msrb.mxu1 %v849_v57 }
 0x15b   : > { %1306 = vmatmul.msk.bf16.vlgmr.msra.gmra.mxu3 %vm705_vm2, %v691_v11 }
 0x1d0   : > { %v721_v21 = vpop.f32.mrf.mxu1 }
 0x1d1   : > { %v722_v22 = vadd.f32 %v721_v21, %v635_v20 }
 0x1d3   : > { %v725_v23 = vsel %vm705_vm2, %v722_v22, -inf }
 0x1d4   : > { %726 = vmax.xlane.f32.xlu1 %v725_v23 }
 0x1d8   : > { %v723_v24 = vpop.f32.mrf.mxu1 }
 0x1de   : > { %v781_v26 = vpop.f32.mrf.mxu3 }
 0x1df   : > { %v782_v27 = vadd.f32 %v781_v26, %v636_v25 }
 0x1e1   : > { %v785_v28 = vsel %vm705_vm2, %v782_v27, -inf }
 0x1e2   : > { %786 = vmax.xlane.f32.xlu2 %v785_v28 }
 0x1e6   : > { %v783_v29 = vpop.f32.mrf.mxu3 }
 0x1ed   : > { %738 = vrot.lane.b32.xlu1 %v702_v12, %s1708_s25 }
 0x1f5   : > { %682 = vrot.lane.b32.xlu1 %v680_v9, %s1707_s9 }
 0x1fa   : > { %798 = vrot.lane.b32.xlu2 %v763_v15, %s1708_s25 }
 0x1fd   : > { %687 = vrot.lane.b32.xlu1 %v680_v9, %s1708_s25 }
 0x205   : > { %693 = vrot.lane.b32.xlu1 %v691_v11, %s1707_s9 }
 0x20d   : > { %697 = vrot.lane.b32.xlu1 %v691_v11, %s1708_s25 }
 0x247   : > { %v727_v30 = vpop.xlane.xlu1 %726 }
 0x248   : > { %v728_v31 = vsub.f32 %v722_v22, %v727_v30 }
 0x24a   : > { %v729_v32 = vpack.c.bf16 %v728_v31, %v728_v31 }
 0x24c   : > { %v730_v33 = vunpack.c.l.bf16 %v729_v32 }
 0x24e   : > { %v731_v34 = vmul.f32 1.442695, %v730_v33 }
 0x250   : > { %1451 = vpow2.f32 %v731_v34 }
 0x255   : > { %v787_v35 = vpop.xlane.xlu2 %786 }
 0x256   : > { %v1452_v36 = vpop.eup %1451  ;;  %v788_v37 = vsub.f32 %v782_v27, %v787_v35 }
 0x257   : > { %v733_v38 = vpack.c.bf16 %v1452_v36, %v1452_v36 }
 0x258   : > { %v789_v39 = vpack.c.bf16 %v788_v37, %v788_v37 }
 0x259   : > { %v734_v40 = vunpack.c.l.bf16 %v733_v38 }
 0x25a   : > { %v790_v41 = vunpack.c.l.bf16 %v789_v39 }
 0x25b   : > { %v735_v42 = vsel %vm705_vm2, %v734_v40, 0.0 }
 0x25c   : > { %v791_v43 = vmul.f32 1.442695, %v790_v41  ;;  %736 = vadd.xlane.f32.xlu0 %v735_v42 }
 0x25d   : > { %v799_v44 = vpop.permute.xlu2 %798 }
 0x25e   : > { %1453 = vpow2.f32 %v791_v43  ;;  %v804_v47 = vsel %vm743_vm3, %v799_v44, 0 }
 0x25f   : > { %v739_v45 = vpop.permute.xlu1 %738 }
 0x260   : > { %v745_v46 = vsel %vm743_vm3, %v739_v45, 0 }
 0x261   : > { %754 = vmatpush.bf16.msra.mxu2 %v745_v46 }
 0x264   : > { %v1454_v48 = vpop.eup %1453  ;;  %1305 = vmatmul.msk.bf16.vlgmr.msra.gmra.mxu2 %vm705_vm2, %v733_v38 }
 0x265   : > { %813 = vmatpush.bf16.msrb.mxu2 %v804_v47  ;;  %v793_v49 = vpack.c.bf16 %v1454_v48, %v1454_v48 }
 0x267   : > { %v683_v50 = vpop.permute.xlu1 %682  ;;  %v794_v51 = vunpack.c.l.bf16 %v793_v49 }
 0x268   : > { %686 = vst.msk [vmem:[%s582_s16] sm:$0xf] %vm685_vm4, %v683_v50 }
 0x269   : > { %v795_v52 = vsel %vm705_vm2, %v794_v51, 0.0 }
 0x26a   : > { %796 = vadd.xlane.f32.xlu2 %v795_v52 }
 0x26f   : > { %v688_v53 = vpop.permute.xlu1 %687 }
 0x270   : > { %690 = vst.msk [vmem:[%s2199_s14] sm:$0xf] %vm685_vm4, %v688_v53 }
 0x274   : > { %1307 = vmatmul.msk.bf16.vlgmr.msrb.gmra.mxu2 %vm705_vm2, %v793_v49 }
 0x277   : > { %v694_v54 = vpop.permute.xlu1 %693 }
 0x278   : > { %696 = vst.msk [vmem:[%s2201_s20] sm:$0xf] %vm685_vm4, %v694_v54 }
 0x27f   : > { %v698_v55 = vpop.permute.xlu1 %697 }
 0x280   : > { %700 = vst.msk [vmem:[%s2198_s26] sm:$0xf] %vm685_vm4, %v698_v55 }
 0x2cf   : > { %v737_v60 = vpop.xlane.xlu0 %736 }
 0x2d0   : > { %1455 = vrcp.f32 %v737_v60 }
 0x2d6   : > { %v1456_v61 = vpop.eup %1455 }
 0x2dd   : > { %v797_v1 = vpop.xlane.xlu2 %796 }
 0x2de   : > { %1457 = vrcp.f32 %v797_v1 }
 0x2e4   : > { %v1458_v3 = vpop.eup %1457 }
 0x2e7   : > { %v756_v62 = vpop.f32.mrf.mxu2 }
 0x2e8   : > { %v761_v63 = vmul.f32 %v1456_v61, %v756_v62 }
 0x2ea   : > { %v822_v0 = vpack.c.bf16 %v761_v63, %v761_v63 }
 0x2ec   : > { %1309 = vmatmul.msk.bf16.vlgmr.msrb.gmra.mxu1 %vm705_vm2, %v822_v0 }
 0x2ef   : > { %v758_v2 = vpop.f32.mrf.mxu2 }
 0x2f7   : > { %v815_v4 = vpop.f32.mrf.mxu2 }
 0x2f8   : > { %v820_v5 = vmul.f32 %v1458_v3, %v815_v4 }
 0x2fa   : > { %v824_v6 = vpack.c.bf16 %v820_v5, %v820_v5 }
 0x2fc   : > { %1308 = vmatmul.msk.bf16.vlgmr.msrb.gmra.mxu0 %vm705_vm2, %v824_v6 }
 0x2ff   : > { %v817_v7 = vpop.f32.mrf.mxu2 }
 0x369   : > { %v860_v8 = vpop.f32.mrf.mxu1 }
 0x371   : > { %v862_v9 = vpop.f32.mrf.mxu1 }
 0x379   : > { %v841_v11 = vpop.f32.mrf.mxu0 }
 0x37a   : > { %v861_v12 = vadd.f32 %v860_v8, %v841_v11 }
 0x37c   : > { %v864_v13 = vadd.f32 %v861_v12, %v821_v10 }
 0x37d   : > { %869 = sbr.rel (%p1310_p8) target bundleno = 1177 (0x499), region = 72 }
 0x37e   : > { %865 = vst.msk [vmem:[#allocation2] sm:$0xff] %vm653_vm1, %v864_v13 }
 0x381   : > { %v843_v14 = vpop.f32.mrf.mxu0 }
 0x382   : > { %v870_v15 = vld [vmem:[%s1929_s17] sm:$0xf]  ;;  %v1709_v22 = vmov 32.0   ;;  %vm919_vm9 = vcmask 257024  }
 0x383   : > { %v871_v17 = vunpack.c.l.bf16 %v870_v15  ;;  %v1459_v18 = vld [vmem:[%s2166_s8] ss:$0 sm:$0xff]  ;;  %1462 = vrcp.f32 %v1709_v22 }
 0x384   : > { %v1460_v43 = vld [vmem:[%s2243_s18] ss:$0 sm:$0xff] }
 0x385   : > { %v872_v16 = vld [vmem:[#allocation2] sm:$0xff] }
 0x386   : > { %v873_v19 = vadd.f32 %v872_v16, %v871_v17  ;;  %v1461_v45 = vld [vmem:[%s2244_s11] ss:$0 sm:$0xff] }
 0x388   : > { %v878_v20 = vadd.f32 %v1459_v18, %v873_v19 }
 0x389   : > { %v1463_v23 = vpop.eup %1462 }
 0x38a   : > { %v881_v21 = vsel %vm653_vm1, %v878_v20, 0.0  ;;  %v885_v24 = vmul.f32 32.0, %v1463_v23  ;;  %vm889_vm5 = vweird.f32 %v1463_v23 }
 0x38b   : > { %882 = vadd.xlane.f32.xlu0 %v881_v21 }
 0x38c   : > { %v886_v25 = vsub.f32 1.0, %v885_v24 }
 0x38e   : > { %v887_v26 = vmul.f32 %v1463_v23, %v886_v25 }
 0x390   : > { %v888_v27 = vadd.f32 %v1463_v23, %v887_v26 }
 0x392   : > { %v890_v28 = vsel %vm889_vm5, %v1463_v23, %v888_v27 }
 0x3fe   : > { %v883_v29 = vpop.xlane.xlu0 %882 }
 0x3ff   : > { %v891_v30 = vmul.f32 %v890_v28, %v883_v29 }
 0x401   : > { %v892_v31 = vsub.f32 %v878_v20, %v891_v30 }
 0x403   : > { %v893_v32 = vmul.f32 %v892_v31, %v892_v31 }
 0x405   : > { %v894_v33 = vsel %vm653_vm1, %v893_v32, 0.0 }
 0x406   : > { %895 = vadd.xlane.f32.xlu0 %v894_v33 }
 0x479   : > { %v896_v34 = vpop.xlane.xlu0 %895 }
 0x47a   : > { %v897_v35 = vmul.f32 %v896_v34, %v890_v28 }
 0x47c   : > { %v898_v36 = vadd.f32 1e-05, %v897_v35 }
 0x47e   : > { %1464 = vrsqrt.f32 %v898_v36  ;;  %vm905_vm7 = vweird.f32 %v898_v36 }
 0x484   : > { %v1465_v37 = vpop.eup %1464 }
 0x485   : > { %v900_v38 = vmul.f32 %v1465_v37, %v898_v36  ;;  %vm906_vm6 = vweird.f32 %v1465_v37 }
 0x486   : > { %vm907_vm8 = vmor %vm905_vm7, %vm906_vm6 }
 0x487   : > { %v901_v39 = vmul.f32 %v1465_v37, %v900_v38 }
 0x489   : > { %v902_v40 = vmul.f32 0.5, %v901_v39 }
 0x48b   : > { %v903_v41 = vsub.f32 1.5, %v902_v40 }
 0x48d   : > { %v904_v42 = vmul.f32 %v1465_v37, %v903_v41 }
 0x48f   : > { %v908_v44 = vsel %vm907_vm8, %v1465_v37, %v904_v42 }
 0x490   : > { %v909_v46 = vmul.f32 %v908_v44, %v892_v31 }
 0x492   : > { %v913_v47 = vmul.f32 %v1460_v43, %v909_v46 }
 0x494   : > { %v917_v48 = vadd.f32 %v1461_v45, %v913_v47 }
 0x496   : > { %v918_v49 = vpack.c.bf16 %v917_v48, %v917_v48 }
 0x498   : > { %920 = vst.msk [vmem:[%s2200_s27] sm:$0xf] %vm919_vm9, %v918_v49 }
 0x499 PF: > { %s2245_s9 = sadd.s32 4294967295, %s1704_s28   ;;  %s2246_s10 = sld [smem:[#allocation19_spill]] }
 0x49a   : > { %s2016_s22 = sand.u32 1, %s2245_s9   ;;  %s970_s30 = sshll.u32 %s582_s16, 4  ;;  %s971_s30 = int_to_ptr.vmem [resolvable:$true] %s970_s30 }
 0x49b   : > { %s2248_s18 = sld [smem:[#allocation37_spill]]  ;;  %s2203_s20 = scalar_lea.sflag [#allocation6], %s2016_s22 }
 0x49c   : > { %s2250_s14 = sld [smem:[#allocation39_spill]] }
 0x49f   : > { %s2202_s23 = sshll.u32 %s2246_s10, 2 }
 0x4a0   : > { %s966_s25 = sadd.s32 %s1688_s24, %s2202_s23 }
 0x4a1   : > { %s2022_s0 = sshll.u32 %s966_s25, 2  ;;  %s2249_s13 = smov %s2248_s18 }
 0x4a2   : > { %s968_s29 = scalar_lea.hbm %s2248_s18, %s2022_s0  ;;  %s1000_s27 = scalar_lea.hbm %s2250_s14, %s2022_s0 }
 0x4a3   : > { %s972_s11 = sshll.u32 %s968_s29, 4  ;;  %s1486_s17 = scalar_lea.hbm %s2249_s13, 32  ;;  %s973_s11 = int_to_ptr.hbm [resolvable:$true] %s972_s11 }
 0x4a4   : > { %s1480_s1 = sshra.s32 %s973_s11, 4  ;;  %s1481_s1 = int_to_ptr.hbm [resolvable:$true] %s1480_s1 }
 0x4a5   : > { %s1482_s24 = scalar_lea.hbm %s1481_s1, 4  ;;  %p1487_p0 = scmp.lt.s32.totalorder %s1481_s1, %s2249_s13 }
 0x4a6   : > { %p1483_p9 = scmp.ne.s32.totalorder %s1481_s1, %s1482_s24  ;;  %p1488_p1 = scmp.lt.s32.totalorder %s1486_s17, %s1482_s24 }
 0x4a8   : > { %p1484_p10 = pnand %p1483_p9, %p1894_p12  ;;  %p1489_p4 = por %p1488_p1, %p1487_p0 }
 0x4aa   : > { %p1485_p11 = pneg %p1484_p10 }
 0x4ac   : > { %p1490_p2 = pnand %p1489_p4, %p1485_p11 }
 0x4ae   : > { %1493 = shalt.err (!%p1490_p2)
}
 0x4af   : > { %1331 = dma.vmem_to_hbm [thread:$0]  (%p1894_p12), %s971_s30, 64, %s973_s11, %s2203_s20  }
 0x4b0   : > { %s2251_s26 = scalar_lea.vmem [#allocation8], %s1918_s15  ;;  %s1004_s9 = sshll.u32 %s1000_s27, 4  ;;  %s1005_s9 = int_to_ptr.hbm [resolvable:$true] %s1004_s9 }
 0x4b1   : > { %s1002_s29 = sshll.u32 %s2251_s26, 4  ;;  %s2204_s16 = scalar_lea.sflag [#allocation9], %s2016_s22  ;;  %s1003_s29 = int_to_ptr.vmem [resolvable:$true] %s1002_s29 }
 0x4b2   : > { %s1508_s25 = sshra.s32 %s1005_s9, 4  ;;  %s1514_s21 = scalar_lea.hbm %s2250_s14, 32  ;;  %s1509_s25 = int_to_ptr.hbm [resolvable:$true] %s1508_s25 }
 0x4b3   : > { %s1510_s1 = scalar_lea.hbm %s1509_s25, 4  ;;  %p1515_p9 = scmp.lt.s32.totalorder %s1509_s25, %s2250_s14 }
 0x4b4   : > { %p1511_p5 = scmp.ne.s32.totalorder %s1509_s25, %s1510_s1  ;;  %p1516_p10 = scmp.lt.s32.totalorder %s1514_s21, %s1510_s1 }
 0x4b6   : > { %p1512_p6 = pnand %p1511_p5, %p1894_p12  ;;  %p1517_p11 = por %p1516_p10, %p1515_p9 }
 0x4b8   : > { %p1513_p8 = pneg %p1512_p6 }
 0x4ba   : > { %p1518_p0 = pnand %p1517_p11, %p1513_p8 }
 0x4bc   : > { %1521 = shalt.err (!%p1518_p0)
}
 0x4bd   : > { %s2252_s27 = sld [smem:[#allocation17_spill]]  ;;  %s2254_s11 = sshll.u32 %s2246_s10, 2 }
 0x4be   : > { %1333 = dma.vmem_to_hbm [thread:$0]  (%p1894_p12), %s1003_s29, 64, %s1005_s9, %s2204_s16  }
 0x4bf   : > { %s2255_s17 = sld [smem:[#allocation36_spill]]  ;;  %s2256_s23 = scalar_lea.vmem [#allocation3], %s1916_s12 }
 0x4c0   : > { %s954_s25 = sshll.u32 %s2256_s23, 4  ;;  %s955_s25 = int_to_ptr.vmem [resolvable:$true] %s954_s25 }
 0x4c3   : > { %s2257_s21 = sand.u32 1, %s2252_s27  }
 0x4c4   : > { %s922_s18 = scalar_lea.sflag [#allocation4], %s2257_s21 }
 0x4c5   : > { %s952_s20 = scalar_lea.hbm %s2255_s17, %s2254_s11  ;;  %s1542_s9 = scalar_lea.hbm %s2255_s17, 8 }
 0x4c6   : > { %s956_s1 = sshll.u32 %s952_s20, 4  ;;  %s957_s1 = int_to_ptr.hbm [resolvable:$true] %s956_s1 }
 0x4c7   : > { %s1536_s2 = sshra.s32 %s957_s1, 4  ;;  %s1537_s2 = int_to_ptr.hbm [resolvable:$true] %s1536_s2 }
 0x4c8   : > { %s1538_s3 = scalar_lea.hbm %s1537_s2, 4  ;;  %p1543_p5 = scmp.lt.s32.totalorder %s1537_s2, %s2255_s17 }
 0x4c9   : > { %p1539_p1 = scmp.ne.s32.totalorder %s1537_s2, %s1538_s3  ;;  %p1544_p6 = scmp.lt.s32.totalorder %s1542_s9, %s1538_s3 }
 0x4cb   : > { %p1540_p4 = pnand %p1539_p1, %p1863_p3  ;;  %p1545_p8 = por %p1544_p6, %p1543_p5 }
 0x4cd   : > { %p1541_p2 = pneg %p1540_p4 }
 0x4cf   : > { %p1546_p9 = pnand %p1545_p8, %p1541_p2 }
 0x4d1   : > { %1549 = shalt.err (!%p1546_p9)
}
 0x4d2   : > { %1330 = dma.vmem_to_hbm [thread:$0]  (%p1863_p3), %s955_s25, 64, %s957_s1, %s922_s18  }
 0x4d3   : > { %s2258_s27 = sld [smem:[#allocation38_spill]]  ;;  %s2260_s23 = scalar_lea.vmem [#allocation7], %s1918_s15 }
 0x4d4   : > { %s986_s21 = sshll.u32 %s2260_s23, 4  ;;  %s2261_s10 = sld [smem:[#allocation40_spill]]  ;;  %s987_s21 = int_to_ptr.vmem [resolvable:$true] %s986_s21 }
 0x4d9   : > { %s2259_s16 = smov %s2258_s27  ;;  %s984_s24 = scalar_lea.hbm %s2258_s27, %s2022_s0 }
 0x4da   : > { %s988_s29 = sshll.u32 %s984_s24, 4  ;;  %s1016_s9 = scalar_lea.hbm %s2261_s10, %s2022_s0  ;;  %s989_s29 = int_to_ptr.hbm [resolvable:$true] %s988_s29 }
 0x4db   : > { %s1564_s26 = sshra.s32 %s989_s29, 4  ;;  %s1570_s18 = scalar_lea.hbm %s2259_s16, 32  ;;  %s1565_s26 = int_to_ptr.hbm [resolvable:$true] %s1564_s26 }
 0x4dc   : > { %s1566_s30 = scalar_lea.hbm %s1565_s26, 4  ;;  %p1571_p0 = scmp.lt.s32.totalorder %s1565_s26, %s2259_s16 }
 0x4dd   : > { %p1567_p10 = scmp.ne.s32.totalorder %s1565_s26, %s1566_s30  ;;  %p1572_p1 = scmp.lt.s32.totalorder %s1570_s18, %s1566_s30 }
 0x4df   : > { %p1568_p11 = pnand %p1567_p10, %p1894_p12  ;;  %p1573_p4 = por %p1572_p1, %p1571_p0 }
 0x4e1   : > { %p1569_p3 = pneg %p1568_p11 }
 0x4e3   : > { %p1574_p2 = pnand %p1573_p4, %p1569_p3 }
 0x4e5   : > { %1577 = shalt.err (!%p1574_p2)
}
 0x4e6   : > { %s2262_s0 = scalar_lea.sflag [#allocation6], %s2016_s22  ;;  %s2263_s20 = scalar_lea.vmem [#allocation10], %s1918_s15 }
 0x4e7   : > { %1332 = dma.vmem_to_hbm [thread:$0]  (%p1894_p12), %s987_s21, 64, %s989_s29, %s2262_s0  }
 0x4e8   : > { %s1018_s27 = sshll.u32 %s2263_s20, 4  ;;  %s1020_s24 = sshll.u32 %s1016_s9, 4  ;;  %s1019_s27 = int_to_ptr.vmem [resolvable:$true] %s1018_s27  ;;  %s1021_s24 = int_to_ptr.hbm [resolvable:$true] %s1020_s24 }
 0x4e9   : > { %s1592_s23 = sshra.s32 %s1021_s24, 4  ;;  %s1598_s30 = scalar_lea.hbm %s2261_s10, 32  ;;  %s1593_s23 = int_to_ptr.hbm [resolvable:$true] %s1592_s23 }
 0x4ea   : > { %s1594_s2 = scalar_lea.hbm %s1593_s23, 4  ;;  %p1599_p9 = scmp.lt.s32.totalorder %s1593_s23, %s2261_s10 }
 0x4eb   : > { %p1595_p5 = scmp.ne.s32.totalorder %s1593_s23, %s1594_s2  ;;  %p1600_p10 = scmp.lt.s32.totalorder %s1598_s30, %s1594_s2 }
 0x4ed   : > { %p1596_p6 = pnand %p1595_p5, %p1894_p12  ;;  %p1601_p11 = por %p1600_p10, %p1599_p9 }
 0x4ef   : > { %p1597_p8 = pneg %p1596_p6 }
 0x4f1   : > { %p1602_p3 = pnand %p1601_p11, %p1597_p8 }
 0x4f3   : > { %1605 = shalt.err (!%p1602_p3)
}
 0x4f4   : > { %s2264_s15 = scalar_lea.sflag [#allocation9], %s2016_s22 }
 0x4f5   : > { %1334 = dma.vmem_to_hbm [thread:$0]  (%p1894_p12), %s1019_s27, 64, %s1021_s24, %s2264_s15  }
 0x4f6 PF: > { %s2265_s21 = sld [smem:[#allocation16_spill]]  ;;  %p1356_p0 = scmp.ge.s32.totalorder %s1704_s28, 2 }
 0x4f8   : > { %p1341_p1 = pnand %p1356_p0, %p1882_p7 }
 0x4fa   : > { %p1342_p4 = pneg %p1341_p1 }
 0x4fc   : > { %s1032_s9 = sand.u32 1, %s2265_s21  }
 0x4fd   : > { %s1033_s18 = scalar_lea.sflag [#allocation4], %s1032_s9 }
 0x4fe   : > { %1651 = dma.done.wait (%p1342_p4), %s1033_s18, 64  }
 0x4ff   : > { %1653 = vsyncadd (%p1342_p4), %s1033_s18, 4294967232  ;;  %s2267_s11 = sadd.s32 4294967294, %s1704_s28   ;;  %p1344_p2 = pnand %p1356_p0, %p1906_p13 }
 0x500   : > { %s1042_s0 = sand.u32 1, %s2267_s11  }
 0x501   : > { %p1345_p5 = pneg %p1344_p2  ;;  %s1043_s19 = scalar_lea.sflag [#allocation6], %s1042_s0 }
 0x503   : > { %1655 = dma.done.wait (%p1345_p5), %s1043_s19, 128  }
 0x504   : > { %1657 = vsyncadd (%p1345_p5), %s1043_s19, 4294967168  ;;  %s1063_s22 = scalar_lea.sflag [#allocation9], %s1042_s0 }
 0x505   : > { %1659 = dma.done.wait (%p1345_p5), %s1063_s22, 128  }
 0x506   : > { %1661 = vsyncadd (%p1345_p5), %s1063_s22, 4294967168  ;;  %s35_s28 = sadd.s32 1, %s1704_s28   ;;  %s2269_s18 = sld [smem:[#allocation14_spill]] }
 0x507   : > { %p32_p7 = scmp.ge.s32.totalorder %s35_s28, 10   ;;  %s2270_s19 = sld [smem:[#allocation15_spill]] }
 0x508   : > { %s2271_s20 = sld [smem:[#allocation28_spill]] }
 0x509   : > { %s2272_s21 = sld [smem:[#allocation17_spill]] }
 0x50a   : > { %s2273_s22 = sld [smem:[#allocation18_spill]] }
 0x50b   : > { %s2274_s23 = sld [smem:[#allocation27_spill]]  ;;  %34 = sbr.rel (!%p32_p7) target bundleno = 23 (0x17), region = 186 }
 0x50c   : > { %s2275_s24 = sld [smem:[#allocation20_spill]] }
 0x50d   : > { %s2276_s25 = sld [smem:[#allocation21_spill]] }
 0x50e   : > { %s2277_s26 = sld [smem:[#allocation22_spill]] }
 0x50f   : > { %s2278_s27 = sld [smem:[#allocation24_spill]] }
 0x510   :  { %1079 = vsyncpa [#allocation4], 1 }
 0x511   :  { %1081 = vsyncpa [#allocation4 + $0x1], 1 }
 0x512   :  { %1082 = vsyncpa [#allocation6], 1 }
 0x513   :  { %1084 = vsyncpa [#allocation6 + $0x1], 1 }
 0x514   :  { %1085 = vsyncpa [#allocation9], 1 }
 0x515   :  { %1087 = vsyncpa [#allocation9 + $0x1], 1 }

</bundles_post_ra>
